<compile_context>
chip_gen: v6e
topology: v6e:2x2x1
jax: 0.10.0
libtpu: 0.0.40
codegen_flags: <defaults>
</compile_context>

<pallas_src>
import jax
import jax.numpy as jnp
from jax.experimental import pallas as pl
from jax.experimental.pallas import tpu as pltpu


def _critic_kernel(x_ref, w1_ref, b1_ref, w2_ref, b2_ref, w3_ref, b3_ref, o_ref):
    # x_ref: [TB, N, D] node embeddings for a tile of TB graphs.
    x = x_ref[...].astype(jnp.float32)

    # pooled = node_embeddings.mean(dim=0), batched -> [TB, D].
    # (Pooling before the first GEMM shrinks the MXU LHS from TB*N to TB rows; with a
    #  batched LHS the MXU rows are already filled, so no need to fuse mean into the dot.)
    pooled = jnp.mean(x, axis=1)

    # Layer 1: Linear(D -> H) + ReLU   (Dropout = identity in eval)
    h1 = jnp.dot(pooled.astype(w1_ref.dtype), w1_ref[...],
                 preferred_element_type=jnp.float32) + b1_ref[...]
    h1 = jnp.maximum(h1, 0.0)

    # Layer 2: Linear(H -> H) + ReLU   (Dropout = identity in eval)
    h2 = jnp.dot(h1.astype(w2_ref.dtype), w2_ref[...],
                 preferred_element_type=jnp.float32) + b2_ref[...]
    h2 = jnp.maximum(h2, 0.0)

    # Output head Linear(H -> 1): lane-dense [1, H] W3 row, VPU multiply + XLU lane
    # reduce instead of a lane-width-1 [H, 1] MXU operand.
    w3_row = w3_ref[...].astype(jnp.float32)               # [1, H]
    out = jnp.sum(h2 * w3_row, axis=-1, keepdims=True)     # [TB, 1]
    out = out + b3_ref[0]                                  # scalar bias from SMEM

    o_ref[...] = out.astype(o_ref.dtype)


def critic_baseline_forward(node_embeddings, params, *, batch_tile=None):
    """node_embeddings: [N, D] (single graph, as in the torch module) or [B, N, D].
    Returns a scalar (single graph) or a [B] vector of value estimates (f32)."""
    w1, b1, w2, b2, w3, b3 = params

    single = node_embeddings.ndim == 2
    x = node_embeddings[None] if single else node_embeddings
    b, n, d = x.shape
    h = w1.shape[1]

    # Batch tile: one grid step handles TB graphs. TB == B for small batches (single
    # step); otherwise a 128-row tile so the (TB, 1) output block stays sublane-aligned.
    if batch_tile is None:
        tb = b if b <= 128 else 128
    else:
        tb = batch_tile
    b_pad = pl.cdiv(b, tb) * tb
    if b_pad != b:
        x = jnp.pad(x, ((0, b_pad - b), (0, 0), (0, 0)))
    g = b_pad // tb

    out = pl.pallas_call(
        _critic_kernel,
        out_shape=jax.ShapeDtypeStruct((b_pad, 1), jnp.float32),
        grid=(g,),
        in_specs=[
            pl.BlockSpec((tb, n, d), lambda i: (i, 0, 0)),       # node-embedding tile
            pl.BlockSpec((d, h), lambda i: (0, 0)),              # W1 [D, H]
            pl.BlockSpec((1, h), lambda i: (0, 0)),              # b1 (f32)
            pl.BlockSpec((h, h), lambda i: (0, 0)),              # W2 [H, H]
            pl.BlockSpec((1, h), lambda i: (0, 0)),              # b2 (f32)
            pl.BlockSpec((1, h), lambda i: (0, 0)),              # W3 row [1, H]
            pl.BlockSpec(memory_space=pltpu.MemorySpace.SMEM),   # b3 scalar (SMEM)
        ],
        out_specs=pl.BlockSpec((tb, 1), lambda i: (i, 0)),
        compiler_params=pltpu.CompilerParams(
            dimension_semantics=("parallel",)),  # v7x: shard batch tiles across both TCs
    )(x, w1, b1, w2, b2, w3, b3)

    values = out[:b, 0]
    return values[0] if single else values


def init_params(key, input_dim, hidden_dim, *, weights_dtype=jnp.float32):
    """Weights stored as [in, out] (pre-transposed vs torch); W3 stored as a [1, H] row.
    Biases stay f32 (VPU work is f32 on all chips); b3 is a (1,) SMEM scalar."""
    k1, k2, k3, k4, k5, k6 = jax.random.split(key, 6)
    s1 = 1.0 / jnp.sqrt(input_dim)
    s2 = 1.0 / jnp.sqrt(hidden_dim)
    w1 = jax.random.uniform(k1, (input_dim, hidden_dim), jnp.float32, -s1, s1)
    b1 = jax.random.uniform(k2, (1, hidden_dim), jnp.float32, -s1, s1)
    w2 = jax.random.uniform(k3, (hidden_dim, hidden_dim), jnp.float32, -s2, s2)
    b2 = jax.random.uniform(k4, (1, hidden_dim), jnp.float32, -s2, s2)
    w3 = jax.random.uniform(k5, (1, hidden_dim), jnp.float32, -s2, s2)  # W3^T row
    b3 = jax.random.uniform(k6, (1,), jnp.float32, -s2, s2)
    w1 = w1.astype(weights_dtype)
    w2 = w2.astype(weights_dtype)
    w3 = w3.astype(weights_dtype)
    return (w1, b1, w2, b2, w3, b3)


def reference_forward(node_embeddings, params):
    """Pure-JAX reference mirroring the kernel's numerics (incl. optional bf16 dots)."""
    w1, b1, w2, b2, w3, b3 = params
    single = node_embeddings.ndim == 2
    x = node_embeddings[None] if single else node_embeddings
    pooled = jnp.mean(x.astype(jnp.float32), axis=1)
    h1 = jnp.maximum(jnp.dot(pooled.astype(w1.dtype), w1,
                             preferred_element_type=jnp.float32) + b1, 0.0)
    h2 = jnp.maximum(jnp.dot(h1.astype(w2.dtype), w2,
                             preferred_element_type=jnp.float32) + b2, 0.0)
    out = jnp.sum(h2 * w3.astype(jnp.float32), axis=-1) + b3[0]
    return out[0] if single else out


if __name__ == "__main__":
    key = jax.random.PRNGKey(0)
    k_x, k_p = jax.random.split(key)

    batch, num_nodes, embed_dim, hidden_dim = 8, 8, 32, 128
    node_embeddings = jax.random.normal(
        k_x, (batch, num_nodes, embed_dim), jnp.float32)

    # --- f32 weights, batched ---
    params_f32 = init_params(k_p, embed_dim, hidden_dim, weights_dtype=jnp.float32)
    out = jax.block_until_ready(critic_baseline_forward(node_embeddings, params_f32))
    ref = reference_forward(node_embeddings, params_f32)
    assert out.shape == (batch,), out.shape
    assert jnp.allclose(out, ref, rtol=1e-5, atol=1e-5), (out, ref)

    # --- single graph (torch forward signature: [N, D] -> scalar) ---
    out1 = jax.block_until_ready(critic_baseline_forward(node_embeddings[0], params_f32))
    ref1 = reference_forward(node_embeddings[0], params_f32)
    assert out1.shape == (), out1.shape
    assert jnp.allclose(out1, ref1, rtol=1e-5, atol=1e-5), (out1, ref1)

    # --- bf16 weights (v6e/v7x MXU-native; f32 accumulate, f32 elementwise) ---
    params_bf16 = init_params(k_p, embed_dim, hidden_dim, weights_dtype=jnp.bfloat16)
    out_b = jax.block_until_ready(critic_baseline_forward(node_embeddings, params_bf16))
    ref_b = reference_forward(node_embeddings, params_bf16)
    assert jnp.allclose(out_b, ref_b, rtol=1e-4, atol=1e-4), (out_b, ref_b)

    print("KERNEL_OK")
</pallas_src>

<mosaic_0001>
module attributes {stable_mosaic.version = 11 : i64} {
  func.func @_critic_kernel(%arg0: i32, %arg1: memref<8x8x32xf32, #tpu.memory_space<vmem>>, %arg2: memref<32x128xf32, #tpu.memory_space<vmem>>, %arg3: memref<1x128xf32, #tpu.memory_space<vmem>>, %arg4: memref<128x128xf32, #tpu.memory_space<vmem>>, %arg5: memref<1x128xf32, #tpu.memory_space<vmem>>, %arg6: memref<1x128xf32, #tpu.memory_space<vmem>>, %arg7: memref<1xf32, #tpu.memory_space<smem>>, %arg8: memref<8x1xf32, #tpu.memory_space<vmem>>) attributes {dimension_semantics = [#tpu.dimension_semantics<parallel>], iteration_bounds = array<i64: 1>, scalar_prefetch = 0 : i64, scratch_operands = 0 : i64, tpu.core_type = #tpu.core_type<tc>, window_params = [{transform_indices = @transform_0, window_bounds = array<i64: 8, 8, 32>}, {pipeline_mode = #tpu.pipeline_mode<synchronous>, transform_indices = @transform_1, window_bounds = array<i64: 32, 128>}, {pipeline_mode = #tpu.pipeline_mode<synchronous>, transform_indices = @transform_2, window_bounds = array<i64: 1, 128>}, {pipeline_mode = #tpu.pipeline_mode<synchronous>, transform_indices = @transform_3, window_bounds = array<i64: 128, 128>}, {pipeline_mode = #tpu.pipeline_mode<synchronous>, transform_indices = @transform_4, window_bounds = array<i64: 1, 128>}, {pipeline_mode = #tpu.pipeline_mode<synchronous>, transform_indices = @transform_5, window_bounds = array<i64: 1, 128>}, {transform_indices = @transform_6, window_bounds = array<i64: 1>}, {transform_indices = @transform_7, window_bounds = array<i64: 8, 1>}]} {
    %c0 = arith.constant 0 : index
    %c0_0 = arith.constant 0 : index
    %c0_1 = arith.constant 0 : index
    %0 = vector.load %arg1[%c0, %c0_0, %c0_1] : memref<8x8x32xf32, #tpu.memory_space<vmem>>, vector<8x8x32xf32>
    %cst = arith.constant dense<0.000000e+00> : vector<8x32xf32>
    %1 = vector.multi_reduction <add>, %0, %cst [1] : vector<8x8x32xf32> to vector<8x32xf32>
    %cst_2 = arith.constant 8.000000e+00 : f32
    %2 = vector.broadcast %cst_2 : f32 to vector<8x32xf32>
    %3 = arith.divf %1, %2 : vector<8x32xf32>
    %c0_3 = arith.constant 0 : index
    %c0_4 = arith.constant 0 : index
    %4 = vector.load %arg2[%c0_3, %c0_4] : memref<32x128xf32, #tpu.memory_space<vmem>>, vector<32x128xf32>
    %cst_5 = arith.constant dense<0.000000e+00> : vector<8x128xf32>
    %5 = tpu.matmul %3, %4, %cst_5 {dimension_numbers = #tpu.dot_dimension_numbers<[1], [0], [0], [1], [0, 0, 1, 1], [], []>} : vector<8x32xf32>, vector<32x128xf32>, vector<8x128xf32> -> vector<8x128xf32>
    %c0_6 = arith.constant 0 : index
    %c0_7 = arith.constant 0 : index
    %6 = vector.load %arg3[%c0_6, %c0_7] : memref<1x128xf32, #tpu.memory_space<vmem>>, vector<1x128xf32>
    %7 = vector.broadcast %6 : vector<1x128xf32> to vector<8x128xf32>
    %8 = arith.addf %5, %7 : vector<8x128xf32>
    %cst_8 = arith.constant 0.000000e+00 : f32
    %9 = vector.broadcast %cst_8 : f32 to vector<8x128xf32>
    %10 = arith.maximumf %8, %9 : vector<8x128xf32>
    %c0_9 = arith.constant 0 : index
    %c0_10 = arith.constant 0 : index
    %11 = vector.load %arg4[%c0_9, %c0_10] : memref<128x128xf32, #tpu.memory_space<vmem>>, vector<128x128xf32>
    %cst_11 = arith.constant dense<0.000000e+00> : vector<8x128xf32>
    %12 = tpu.matmul %10, %11, %cst_11 {dimension_numbers = #tpu.dot_dimension_numbers<[1], [0], [0], [1], [0, 0, 1, 1], [], []>} : vector<8x128xf32>, vector<128x128xf32>, vector<8x128xf32> -> vector<8x128xf32>
    %c0_12 = arith.constant 0 : index
    %c0_13 = arith.constant 0 : index
    %13 = vector.load %arg5[%c0_12, %c0_13] : memref<1x128xf32, #tpu.memory_space<vmem>>, vector<1x128xf32>
    %14 = vector.broadcast %13 : vector<1x128xf32> to vector<8x128xf32>
    %15 = arith.addf %12, %14 : vector<8x128xf32>
    %cst_14 = arith.constant 0.000000e+00 : f32
    %16 = vector.broadcast %cst_14 : f32 to vector<8x128xf32>
    %17 = arith.maximumf %15, %16 : vector<8x128xf32>
    %c0_15 = arith.constant 0 : index
    %c0_16 = arith.constant 0 : index
    %18 = vector.load %arg6[%c0_15, %c0_16] : memref<1x128xf32, #tpu.memory_space<vmem>>, vector<1x128xf32>
    %19 = vector.broadcast %18 : vector<1x128xf32> to vector<8x128xf32>
    %20 = arith.mulf %17, %19 : vector<8x128xf32>
    %cst_17 = arith.constant dense<0.000000e+00> : vector<8xf32>
    %21 = vector.multi_reduction <add>, %20, %cst_17 [1] : vector<8x128xf32> to vector<8xf32>
    %22 = vector.shape_cast %21 : vector<8xf32> to vector<8x1xf32>
    %c0_18 = arith.constant 0 : index
    %23 = memref.load %arg7[%c0_18] : memref<1xf32, #tpu.memory_space<smem>>
    %24 = vector.broadcast %23 : f32 to vector<8x1xf32>
    %25 = arith.addf %22, %24 : vector<8x1xf32>
    %c0_19 = arith.constant 0 : index
    %c0_20 = arith.constant 0 : index
    %26 = vector.load %arg8[%c0_19, %c0_20] : memref<8x1xf32, #tpu.memory_space<vmem>>, vector<8x1xf32>
    tpu.vector_store %arg8[%c0_19, %c0_20], %25 {strides = array<i32>} : memref<8x1xf32, #tpu.memory_space<vmem>>, vector<8x1xf32>,
    return
  }
  func.func @transform_0(%arg0: i32) -> (i32, i32, i32) {
    %c0_i32 = arith.constant 0 : i32
    %c0_i32_0 = arith.constant 0 : i32
    %c0_i32_1 = arith.constant 0 : i32
    return %arg0, %c0_i32, %c0_i32_0 : i32, i32, i32
  }
  func.func @transform_1(%arg0: i32) -> (i32, i32) {
    %c0_i32 = arith.constant 0 : i32
    %c0_i32_0 = arith.constant 0 : i32
    %c0_i32_1 = arith.constant 0 : i32
    return %c0_i32, %c0_i32_0 : i32, i32
  }
  func.func @transform_2(%arg0: i32) -> (i32, i32) {
    %c0_i32 = arith.constant 0 : i32
    %c0_i32_0 = arith.constant 0 : i32
    %c0_i32_1 = arith.constant 0 : i32
    return %c0_i32, %c0_i32_0 : i32, i32
  }
  func.func @transform_3(%arg0: i32) -> (i32, i32) {
    %c0_i32 = arith.constant 0 : i32
    %c0_i32_0 = arith.constant 0 : i32
    %c0_i32_1 = arith.constant 0 : i32
    return %c0_i32, %c0_i32_0 : i32, i32
  }
  func.func @transform_4(%arg0: i32) -> (i32, i32) {
    %c0_i32 = arith.constant 0 : i32
    %c0_i32_0 = arith.constant 0 : i32
    %c0_i32_1 = arith.constant 0 : i32
    return %c0_i32, %c0_i32_0 : i32, i32
  }
  func.func @transform_5(%arg0: i32) -> (i32, i32) {
    %c0_i32 = arith.constant 0 : i32
    %c0_i32_0 = arith.constant 0 : i32
    %c0_i32_1 = arith.constant 0 : i32
    return %c0_i32, %c0_i32_0 : i32, i32
  }
  func.func @transform_6(%arg0: i32) -> i32 {
    %c0_i32 = arith.constant 0 : i32
    %c0_i32_0 = arith.constant 0 : i32
    return %c0_i32 : i32
  }
  func.func @transform_7(%arg0: i32) -> (i32, i32) {
    %c0_i32 = arith.constant 0 : i32
    %c0_i32_0 = arith.constant 0 : i32
    return %arg0, %c0_i32 : i32, i32
  }
}

</mosaic_0001>

<bundles_post_ra>
// kernel: tpu_custom_call.1
= control target key start
LH: loop header
LB: loop body
LE: loop exit
PB: predicated region body
PF: predicated region fallthrough
CT: control target
= control target key end

     0   :  { %13 = vsyncpa [#allocation4], 0  ;;  %s613_s0 = inlined_call_operand.hbm [shape: f32[8,8,32], index: 0, kind: input, shape index: {}]   ;;  %s614_s1 = inlined_call_operand.hbm [shape: f32[32,128], index: 1, kind: input, shape index: {}]   ;;  %s615_s2 = inlined_call_operand.vmem [shape: f32[1,128], index: 2, kind: input, shape index: {}]   ;;  %s616_s3 = inlined_call_operand.hbm [shape: f32[128,128], index: 3, kind: input, shape index: {}]   ;;  %s617_s4 = inlined_call_operand.vmem [shape: f32[1,128], index: 4, kind: input, shape index: {}]   ;;  %s618_s5 = inlined_call_operand.vmem [shape: f32[1,128], index: 5, kind: input, shape index: {}]   ;;  %s619_s6 = inlined_call_operand.<no memory space> [shape: f32[1], index: 6, kind: input, shape index: {}]   ;;  %s620_s7 = inlined_call_operand.vmem [shape: f32[8,1], index: 7, kind: output, shape index: {}]  }
   0x1   :  { %14 = vsyncpa [#allocation6], 0  ;;  %s506_s24 = smov [#allocation5]   ;;  %s507_s26 = smov [#allocation3]  }
   0x2   :  { %s32_s25 = sshll.u32 %s506_s24, 4  ;;  %s20_s27 = sshll.u32 %s507_s26, 4  ;;  %s33_s25 = int_to_ptr.vmem [resolvable:$true] %s32_s25  ;;  %s21_s27 = int_to_ptr.vmem [resolvable:$true] %s20_s27 }
   0x3   :  { %s450_s28 = scalar_lea.vmem %s33_s25, 512  ;;  %p455_p1 = scmp.lt.s32.totalorder %s33_s25, %s33_s25 }
   0x4   :  { %p451_p0 = scmp.ne.s32.totalorder %s33_s25, %s450_s28  ;;  %p456_p2 = scmp.lt.s32.totalorder %s450_s28, %s450_s28 }
   0x6   :  { %p457_p3 = por %p456_p2, %p455_p1 }
   0x8   :  { %p458_p4 = pnand %p457_p3, %p451_p0 }
   0xa   :  { %461 = shalt.err (!%p458_p4)
}
   0xb   :  { %s508_s29 = smov 128   ;;  %s509_s30 = smov 8  }
   0xc   :  { %38 = dma.hbm_to_vmem [thread:$0]  %s614_s1, 512, %s33_s25, [#allocation6], %s508_s29, %s508_s29, %s509_s30  }
   0xd   :  { %s470_s10 = scalar_lea.vmem %s21_s27, 1024  ;;  %p475_p6 = scmp.lt.s32.totalorder %s21_s27, %s21_s27 }
   0xe   :  { %p471_p5 = scmp.ne.s32.totalorder %s21_s27, %s470_s10  ;;  %p476_p7 = scmp.lt.s32.totalorder %s470_s10, %s470_s10 }
  0x10   :  { %p477_p8 = por %p476_p7, %p475_p6 }
  0x12   :  { %p478_p9 = pnand %p477_p8, %p471_p5 }
  0x14   :  { %481 = shalt.err (!%p478_p9)
}
  0x15   :  { %26 = dma.hbm_to_vmem [thread:$0]  %s613_s0, 1024, %s21_s27, [#allocation4], %s508_s29, %s508_s29, %s509_s30  }
  0x16   :  { %s510_s13 = smov [#allocation7]  }
  0x17   :  { %s46_s14 = sshll.u32 %s510_s13, 4  ;;  %s47_s14 = int_to_ptr.vmem [resolvable:$true] %s46_s14 }
  0x18   :  { %s490_s15 = scalar_lea.vmem %s47_s14, 2048  ;;  %p495_p11 = scmp.lt.s32.totalorder %s47_s14, %s47_s14 }
  0x19   :  { %p491_p10 = scmp.ne.s32.totalorder %s47_s14, %s490_s15  ;;  %p496_p12 = scmp.lt.s32.totalorder %s490_s15, %s490_s15 }
  0x1b   :  { %p497_p13 = por %p496_p12, %p495_p11 }
  0x1d   :  { %p498_p0 = pnand %p497_p13, %p491_p10 }
  0x1f   :  { %501 = shalt.err (!%p498_p0)
}
  0x20   :  { %52 = dma.hbm_to_vmem [thread:$0]  %s616_s3, 2048, %s47_s14, [#allocation6], %s508_s29, %s508_s29, %s509_s30  }
  0x21   :  { %502 = dma.done.wait [#allocation4], 1024  }
  0x22   :  { %503 = vsyncadd [#allocation4], 4294966272 }
  0x23   :  { %504 = dma.done.wait [#allocation6], 2560  }
  0x24   :  { %505 = vsyncadd [#allocation6], 4294964736  ;;  %v511_v0 = vmov 0.0   ;;  %vm512_vm0 = vmmov 0   ;;  %vm76_vm1 = vcmask 261120   ;;  %v145_v1 = vld [vmem:[#allocation5 + $0x18] sm:$0xff] }
  0x25   :  { %389 = vmatprep.subr.mxu0 %v511_v0  ;;  %397 = vmatprep.mubr.msk.f32.mxu0 %vm512_vm0, %v511_v0  ;;  %v144_v2 = vld [vmem:[#allocation5 + $0x10] sm:$0xff]  ;;  %v143_v3 = vld [vmem:[#allocation5 + $0x8] sm:$0xff]  ;;  %v68_v4 = vld [vmem:[#allocation3] sm:$0xff]  ;;  %vm161_vm2 = vcmask 1041409   ;;  %vm163_vm3 = vcmask 1042434   ;;  %vm165_vm4 = vcmask 1043459  }
  0x26   :  { %400 = vmatprep.subr.mxu1 %v511_v0  ;;  %432 = vmatprep.mubr.msk.f32.mxu1 %vm512_vm0, %v511_v0  ;;  %v69_v5 = vld [vmem:[#allocation3 + $0x8] sm:$0xff]  ;;  %v142_v6 = vld [vmem:[#allocation5] sm:$0xff]  ;;  %v70_v7 = vld [vmem:[#allocation3 + $0x10] sm:$0xff]  ;;  %v77_v10 = vsel %vm76_vm1, %v68_v4, 0.0  ;;  %vm167_vm5 = vcmask 1044484   ;;  %vm169_vm6 = vcmask 1045509  }
  0x27   :  { %390 = vmatpush3.msra.mxu0 %v145_v1  ;;  %v71_v8 = vld [vmem:[#allocation3 + $0x18] sm:$0xff]  ;;  %v72_v9 = vld [vmem:[#allocation3 + $0x20] sm:$0xff]  ;;  %v84_v11 = vsel %vm76_vm1, %v69_v5, 0.0  ;;  %v73_v12 = vld [vmem:[#allocation3 + $0x28] sm:$0xff]  ;;  %v78_v15 = vrot.slane %v77_v10, 4  ;;  %v91_v17 = vsel %vm76_vm1, %v70_v7, 0.0 }
  0x28   :  { %391 = vmatprep.subr.mxu0 %v511_v0  ;;  %v74_v13 = vld [vmem:[#allocation3 + $0x30] sm:$0xff]  ;;  %v75_v14 = vld [vmem:[#allocation3 + $0x38] sm:$0xff]  ;;  %v85_v16 = vrot.slane %v84_v11, 4  ;;  %v92_v18 = vrot.slane %v91_v17, 4  ;;  %v98_v19 = vsel %vm76_vm1, %v71_v8, 0.0  ;;  %v105_v20 = vsel %vm76_vm1, %v72_v9, 0.0 }
  0x29   :  { %392 = vmatpush3.msra.mxu0 %v144_v2  ;;  %v112_v21 = vsel %vm76_vm1, %v73_v12, 0.0  ;;  %v263_v22 = vld [vmem:[#allocation7 + $0x78] sm:$0xff]  ;;  %v262_v23 = vld [vmem:[#allocation7 + $0x70] sm:$0xff]  ;;  %v79_v24 = vadd.f32 %v78_v15, %v77_v10  ;;  %v99_v26 = vrot.slane %v98_v19, 4  ;;  %v106_v27 = vrot.slane %v105_v20, 4  ;;  %v261_v32 = vld [vmem:[#allocation7 + $0x68] sm:$0xff] }
  0x2a   :  { %393 = vmatprep.subr.mxu0 %v511_v0  ;;  %v86_v25 = vadd.f32 %v85_v16, %v84_v11  ;;  %401 = vmatpush3.msra.mxu1 %v263_v22  ;;  %v93_v28 = vadd.f32 %v92_v18, %v91_v17  ;;  %v113_v29 = vrot.slane %v112_v21, 4  ;;  %v119_v30 = vsel %vm76_vm1, %v74_v13, 0.0  ;;  %v260_v41 = vld [vmem:[#allocation7 + $0x60] sm:$0xff]  ;;  %v259_v50 = vld [vmem:[#allocation7 + $0x58] sm:$0xff]  ;;  %v258_v59 = vld [vmem:[#allocation7 + $0x50] sm:$0xff] }
  0x2b   :  { %394 = vmatpush3.msra.mxu0 %v143_v3  ;;  %v126_v31 = vsel %vm76_vm1, %v75_v14, 0.0  ;;  %402 = vmatprep.subr.mxu1 %v511_v0  ;;  %v80_v33 = vrot.slane %v79_v24, 2  ;;  %v100_v35 = vadd.f32 %v99_v26, %v98_v19  ;;  %v107_v36 = vadd.f32 %v106_v27, %v105_v20  ;;  %v257_v5 = vld [vmem:[#allocation7 + $0x48] sm:$0xff]  ;;  %v256_v14 = vld [vmem:[#allocation7 + $0x40] sm:$0xff]  ;;  %v255_v22 = vld [vmem:[#allocation7 + $0x38] sm:$0xff] }
  0x2c   :  { %395 = vmatprep.subr.mxu0 %v511_v0  ;;  %v87_v34 = vrot.slane %v86_v25, 2  ;;  %403 = vmatpush3.msra.mxu1 %v262_v23  ;;  %v94_v37 = vrot.slane %v93_v28, 2  ;;  %v114_v38 = vadd.f32 %v113_v29, %v112_v21  ;;  %v120_v39 = vrot.slane %v119_v30, 4  ;;  %v254_v27 = vld [vmem:[#allocation7 + $0x30] sm:$0xff] }
  0x2d   :  { %396 = vmatpush3.msra.mxu0 %v142_v6  ;;  %v127_v40 = vrot.slane %v126_v31, 4  ;;  %404 = vmatprep.subr.mxu1 %v511_v0  ;;  %v81_v42 = vadd.f32 %v80_v33, %v79_v24  ;;  %v101_v44 = vrot.slane %v100_v35, 2  ;;  %v108_v45 = vrot.slane %v107_v36, 2  ;;  %v251_v33 = vld [vmem:[#allocation7 + $0x18] sm:$0xff] }
  0x2e   :  { %v88_v43 = vadd.f32 %v87_v34, %v86_v25  ;;  %405 = vmatpush3.msra.mxu1 %v261_v32  ;;  %v95_v46 = vadd.f32 %v94_v37, %v93_v28  ;;  %v115_v47 = vrot.slane %v114_v38, 2  ;;  %v121_v48 = vadd.f32 %v120_v39, %v119_v30  ;;  %v253_v30 = vld [vmem:[#allocation7 + $0x28] sm:$0xff]  ;;  %v252_v32 = vld [vmem:[#allocation7 + $0x20] sm:$0xff]  ;;  %v250_v34 = vld [vmem:[#allocation7 + $0x10] sm:$0xff] }
  0x2f   :  { %v128_v49 = vadd.f32 %v127_v40, %v126_v31  ;;  %406 = vmatprep.subr.mxu1 %v511_v0  ;;  %v82_v51 = vrot.slane %v81_v42, 1  ;;  %v102_v53 = vadd.f32 %v101_v44, %v100_v35  ;;  %v109_v54 = vadd.f32 %v108_v45, %v107_v36  ;;  %v249_v35 = vld [vmem:[#allocation7 + $0x8] sm:$0xff]  ;;  %v248_v36 = vld [vmem:[#allocation7] sm:$0xff] }
  0x30   :  { %v89_v52 = vrot.slane %v88_v43, 1  ;;  %407 = vmatpush3.msra.mxu1 %v260_v41  ;;  %v96_v55 = vrot.slane %v95_v46, 1  ;;  %v116_v56 = vadd.f32 %v115_v47, %v114_v38  ;;  %v122_v57 = vrot.slane %v121_v48, 2  ;;  %v363_v37 = vld [vmem:[%s615_s2] ss:$0 sm:$0xff] }
  0x31   :  { %v129_v58 = vrot.slane %v128_v49, 2  ;;  %408 = vmatprep.subr.mxu1 %v511_v0  ;;  %v83_v60 = vadd.f32 %v82_v51, %v81_v42  ;;  %v103_v62 = vrot.slane %v102_v53, 1  ;;  %v110_v63 = vrot.slane %v109_v54, 1  ;;  %v365_v42 = vld [vmem:[%s617_s4] ss:$0 sm:$0xff] }
  0x32   :  { %v90_v61 = vadd.f32 %v89_v52, %v88_v43  ;;  %409 = vmatpush3.msra.mxu1 %v259_v50  ;;  %v97_v1 = vadd.f32 %v96_v55, %v95_v46  ;;  %v117_v2 = vrot.slane %v116_v56, 1  ;;  %v123_v3 = vadd.f32 %v122_v57, %v121_v48 }
  0x33   :  { %v130_v4 = vadd.f32 %v129_v58, %v128_v49  ;;  %410 = vmatprep.subr.mxu1 %v511_v0  ;;  %v104_v6 = vadd.f32 %v103_v62, %v102_v53  ;;  %v111_v7 = vadd.f32 %v110_v63, %v109_v54  ;;  %v134_v8 = vmul.f32 0.125, %v83_v60 }
  0x34   :  { %v135_v9 = vmul.f32 0.125, %v90_v61  ;;  %411 = vmatpush3.msra.mxu1 %v258_v59  ;;  %v118_v10 = vadd.f32 %v117_v2, %v116_v56  ;;  %v124_v11 = vrot.slane %v123_v3, 1  ;;  %v136_v13 = vmul.f32 0.125, %v97_v1 }
  0x35   :  { %v131_v12 = vrot.slane %v130_v4, 1  ;;  %412 = vmatprep.subr.mxu1 %v511_v0  ;;  %v137_v15 = vmul.f32 0.125, %v104_v6  ;;  %v138_v16 = vmul.f32 0.125, %v111_v7  ;;  %vm171_vm7 = vcmask 1046534  }
  0x36   :  { %v162_v17 = vsel %vm161_vm2, %v135_v9, %v134_v8  ;;  %413 = vmatpush3.msra.mxu1 %v257_v5  ;;  %v125_v18 = vadd.f32 %v124_v11, %v123_v3  ;;  %v139_v20 = vmul.f32 0.125, %v118_v10  ;;  %vm173_vm8 = vcmask 1047559  }
  0x37   :  { %v132_v19 = vadd.f32 %v131_v12, %v130_v4  ;;  %v164_v21 = vsel %vm163_vm3, %v136_v13, %v162_v17  ;;  %414 = vmatprep.subr.mxu1 %v511_v0  ;;  %v353_v48 = vstv %s619_s6  ;;  %vm355_vm9 = vcmask 7168  }
  0x38   :  { %v166_v23 = vsel %vm165_vm4, %v137_v15, %v164_v21  ;;  %415 = vmatpush3.msra.mxu1 %v256_v14  ;;  %v140_v24 = vmul.f32 0.125, %v125_v18 }
  0x39   :  { %v141_v25 = vmul.f32 0.125, %v132_v19  ;;  %v168_v26 = vsel %vm167_vm5, %v138_v16, %v166_v23  ;;  %416 = vmatprep.subr.mxu1 %v511_v0 }
  0x3a   :  { %v170_v28 = vsel %vm169_vm6, %v139_v20, %v168_v26  ;;  %417 = vmatpush3.msra.mxu1 %v255_v22 }
  0x3b   :  { %v172_v29 = vsel %vm171_vm7, %v140_v24, %v170_v28  ;;  %418 = vmatprep.subr.mxu1 %v511_v0 }
  0x3c   :  { %v174_v31 = vsel %vm173_vm8, %v141_v25, %v172_v29  ;;  %419 = vmatpush3.msra.mxu1 %v254_v27 }
  0x3d   :  { %398 = vmatmul.mubr.msk.f32.vlgmr.msra.gmra.mxu0 %vm76_vm1, %v174_v31  ;;  %420 = vmatprep.subr.mxu1 %v511_v0 }
  0x3e   :  { %421 = vmatpush3.msra.mxu1 %v253_v30 }
  0x3f   :  { %422 = vmatprep.subr.mxu1 %v511_v0 }
  0x40   :  { %423 = vmatpush3.msra.mxu1 %v252_v32 }
  0x41   :  { %424 = vmatprep.subr.mxu1 %v511_v0 }
  0x42   :  { %425 = vmatpush3.msra.mxu1 %v251_v33 }
  0x43   :  { %426 = vmatprep.subr.mxu1 %v511_v0 }
  0x44   :  { %427 = vmatpush3.msra.mxu1 %v250_v34 }
  0x45   :  { %428 = vmatprep.subr.mxu1 %v511_v0 }
  0x46   :  { %429 = vmatpush3.msra.mxu1 %v249_v35 }
  0x47   :  { %430 = vmatprep.subr.mxu1 %v511_v0  ;;  %v366_v0 = vld [vmem:[%s618_s5] ss:$0 sm:$0xff] }
  0x48   :  { %431 = vmatpush3.msra.mxu1 %v248_v36 }
  0xfd   :  { %v243_v38 = vpop.f32.mrf.mxu0 }
  0xfe   :  { %v244_v39 = vadd.f32 %v363_v37, %v243_v38 }
  0xff   :  { %v399_v40 = vpop.f32.mrf.mxu0 }
 0x100   :  { %v247_v41 = vmax.f32 %v244_v39, 0.0 }
 0x102   :  { %433 = vmatmul.mubr.f32.vlgmr.msra.gmra.mxu1 %v247_v41 }
 0x1c2   :  { %v337_v43 = vpop.f32.mrf.mxu1 }
 0x1c3   :  { %v338_v44 = vadd.f32 %v365_v42, %v337_v43 }
 0x1c4   :  { %v434_v45 = vpop.f32.mrf.mxu1 }
 0x1c5   :  { %v341_v46 = vmax.f32 %v338_v44, 0.0 }
 0x1c7   :  { %v349_v47 = vmul.f32 %v366_v0, %v341_v46 }
 0x1c9   :  { %350 = vadd.xlane.f32.xlu0 %v349_v47 }
 0x252   :  { %v351_v49 = vpop.xlane.xlu0 %350 }
 0x253   :  { %v354_v50 = vadd.f32 %v353_v48, %v351_v49 }
 0x255   :  { %356 = vst.msk [vmem:[%s620_s7] sm:$0xff] %vm355_vm9, %v354_v50 }
 0x256   :  { %361 = vsyncpa [#allocation4], 1 }
 0x257   :  { %362 = vsyncpa [#allocation6], 1 }

</bundles_post_ra>
